<compile_context>
chip_gen: v5e
topology: v5e:2x2
jax: 0.10.0
libtpu: 0.0.40
codegen_flags: <defaults>
</compile_context>

<pallas_src>
import math

import jax
import jax.numpy as jnp
from jax.experimental import pallas as pl
from jax.experimental.pallas import tpu as pltpu

_LANE = 128


def _cdiv(a: int, b: int) -> int:
    return -(-a // b)


def _round_up(a: int, b: int) -> int:
    return _cdiv(a, b) * b


def _largest_divisor_leq(n: int, cap: int) -> int:
    for d in range(min(n, cap), 0, -1):
        if n % d == 0:
            return d
    return 1


def _if_kernel_factory(vth: float, reset: bool, t_tile: int, r_tile: int, chunk: int):
    def kernel(x_ref, o_ref, mem_ref):
        # x_ref/o_ref: (t_tile, r_tile, 128); mem_ref: (r_tile, 128) f32 scratch.
        t = pl.program_id(1)

        @pl.when(t == 0)
        def _():
            mem_ref[...] = jnp.zeros_like(mem_ref)

        # Sublane chunking: per chunk, the membrane (chunk x 128 f32, <= 8
        # vregs) stays live in vregs across all t_tile substeps, with exactly
        # one scratch load and one scratch store per chunk.
        for rc in range(0, r_tile, chunk):
            cur = min(chunk, r_tile - rc)
            rows = pl.ds(rc, cur)
            mem = mem_ref[rows, :]
            for i in range(t_tile):
                mem = mem + x_ref[i, rows, :].astype(jnp.float32)
                spk = mem > vth
                o_ref[i, rows, :] = spk.astype(o_ref.dtype)
                if reset:
                    # Hard reset to 0. (Reference uses mem*(1-spike), which
                    # only differs for non-finite mem — documented deviation.)
                    mem = jnp.where(spk, 0.0, mem)
                else:
                    mem = jnp.where(spk, mem - vth, mem)  # soft reset by Vth
            mem_ref[rows, :] = mem

    return kernel


def if_neuron_pallas(x, vth: float = 1.0, reset: bool = True):
    """Forward of the IF spiking neuron. x: [T, ...] -> spikes, same shape/dtype."""
    T = x.shape[0]
    feat_shape = x.shape[1:]
    n_feat = math.prod(feat_shape) if feat_shape else 1
    itemsize = jnp.dtype(x.dtype).itemsize

    # dtype-aware minimum sublane multiple: (8,128) f32, (16,128) bf16/f16,
    # (32,128) int8/fp8.
    sub = {4: 8, 2: 16, 1: 32}.get(itemsize, 8)

    # Time tiling: largest divisor of T up to 8 (no partial time blocks).
    t_tile = _largest_divisor_leq(T, 8)
    tt = T // t_tile

    # Feature rows of 128 lanes. Only pad to the next lane multiple when the
    # 3-D reshape requires it (<= 127 columns); never to a full block.
    R = _cdiv(n_feat, _LANE)
    n_lanes = R * _LANE

    # Block sizing: target ~4 MiB input blocks (dtype-aware).
    bytes_per_row = t_tile * _LANE * itemsize
    target_block_bytes = 4 << 20
    r_cap = max(sub, (target_block_bytes // bytes_per_row) // sub * sub)

    if R <= sub:
        r_tile = R  # block dim equals full array dim (always legal)
    elif R <= r_cap:
        # Prefer F >= 2 so the "parallel" feature axis splits across both
        # v7x TensorCores, as long as each half is >= ~512 KiB of input.
        half = _round_up(_cdiv(R, 2), sub)
        min_split_rows = max(sub, (512 << 10) // bytes_per_row)
        r_tile = half if half >= min_split_rows else _round_up(R, sub)
    else:
        r_tile = r_cap
    F = _cdiv(R, r_tile)  # partial last block handled by masked edge stores

    # In-kernel membrane chunk (64 is a multiple of 8/16/32).
    chunk = min(r_tile, 64)

    x_flat = x.reshape(T, n_feat)
    if n_lanes != n_feat:
        # Lane padding only. Padded columns are sliced off below, so whatever
        # values (or spikes) they produce are irrelevant to correctness.
        x_flat = jnp.pad(x_flat, ((0, 0), (0, n_lanes - n_feat)))
    x3 = x_flat.reshape(T, R, _LANE)

    kernel = _if_kernel_factory(float(vth), bool(reset), t_tile, r_tile, chunk)

    out3 = pl.pallas_call(
        kernel,
        out_shape=jax.ShapeDtypeStruct((T, R, _LANE), x.dtype),
        grid=(F, tt),
        in_specs=[pl.BlockSpec((t_tile, r_tile, _LANE), lambda f, t: (t, f, 0))],
        out_specs=pl.BlockSpec((t_tile, r_tile, _LANE), lambda f, t: (t, f, 0)),
        scratch_shapes=[pltpu.VMEM((r_tile, _LANE), jnp.float32)],
        compiler_params=pltpu.CompilerParams(
            # Feature tiles independent -> "parallel" (megacore on v7x);
            # time carries the membrane state -> "arbitrary" (sequential).
            dimension_semantics=("parallel", "arbitrary"),
            # ~4 MiB in + ~4 MiB out, double-buffered, + scratch ~= 17 MiB;
            # raise above v5e's 16 MiB default, safe on all generations.
            vmem_limit_bytes=32 << 20,
        ),
    )(x3)

    if n_lanes != n_feat:
        out = out3.reshape(T, n_lanes)[:, :n_feat].reshape((T,) + feat_shape)
    else:
        out = out3.reshape((T,) + feat_shape)
    return out


def if_neuron_ref(x, vth: float = 1.0, reset: bool = True):
    """Pure-JAX reference matching the PyTorch forward."""
    xf = x.astype(jnp.float32)

    def step(mem, xt):
        mem = mem + xt
        spike = (mem > vth).astype(jnp.float32)
        if reset:
            mem = mem * (1.0 - spike)
        else:
            mem = jnp.where(spike > 0, mem - vth, mem)
        return mem, spike

    _, out = jax.lax.scan(step, jnp.zeros_like(xf[0]), xf)
    return out.astype(x.dtype)


if __name__ == "__main__":
    key = jax.random.PRNGKey(0)
    T, B, C, H, W = 8, 2, 4, 16, 16
    x = jax.random.normal(key, (T, B, C, H, W), dtype=jnp.float32)

    out = jax.block_until_ready(if_neuron_pallas(x, vth=1.0, reset=True))
    ref = if_neuron_ref(x, vth=1.0, reset=True)
    assert out.shape == (T, B, C, H, W)
    assert jnp.allclose(out, ref), "mismatch vs reference (reset=True)"

    out2 = jax.block_until_ready(if_neuron_pallas(x, vth=1.0, reset=False))
    ref2 = if_neuron_ref(x, vth=1.0, reset=False)
    assert jnp.allclose(out2, ref2), "mismatch vs reference (reset=False)"

    # Lane-misaligned feature count (exercises the minimal 128-lane pad path).
    x_odd = jax.random.normal(jax.random.PRNGKey(1), (T, 2, 5, 19), dtype=jnp.float32)
    out_odd = jax.block_until_ready(if_neuron_pallas(x_odd))
    assert jnp.allclose(out_odd, if_neuron_ref(x_odd)), "mismatch (ragged lanes)"

    # Row count not a sublane multiple -> partial block with masked edge
    # stores handled inside the pallas_call (no block-sized padding).
    x_part = jax.random.normal(jax.random.PRNGKey(2), (T, 2, 10, 128), dtype=jnp.float32)
    out_part = jax.block_until_ready(if_neuron_pallas(x_part, reset=False))
    assert jnp.allclose(out_part, if_neuron_ref(x_part, reset=False)), "mismatch (partial block)"

    # TODO(synk): the clamp-based surrogate gradient (out_bp) only affects the
    # backward pass; this kernel implements the forward values only.
    print("KERNEL_OK")
</pallas_src>

<mosaic_0001>
module attributes {stable_mosaic.version = 11 : i64} {
  func.func @kernel(%arg0: i32, %arg1: i32, %arg2: memref<8x16x128xf32, #tpu.memory_space<vmem>>, %arg3: memref<8x16x128xf32, #tpu.memory_space<vmem>>, %arg4: memref<16x128xf32, #tpu.memory_space<vmem>>) attributes {dimension_semantics = [#tpu.dimension_semantics<parallel>, #tpu.dimension_semantics<arbitrary>], iteration_bounds = array<i64: 1, 1>, scalar_prefetch = 0 : i64, scratch_operands = 1 : i64, tpu.core_type = #tpu.core_type<tc>, window_params = [{transform_indices = @transform_0, window_bounds = array<i64: 8, 16, 128>}, {transform_indices = @transform_1, window_bounds = array<i64: 8, 16, 128>}]} {
    %c0_i32 = arith.constant 0 : i32
    %0 = arith.cmpi eq, %arg1, %c0_i32 : i32
    %1 = arith.extui %0 : i1 to i32
    %c0_i32_0 = arith.constant 0 : i32
    %2 = arith.cmpi ne, %1, %c0_i32_0 : i32
    scf.if %2 {
      %cst_60 = arith.constant 0.000000e+00 : f32
      %101 = vector.broadcast %cst_60 : f32 to vector<16x128xf32>
      %c0_61 = arith.constant 0 : index
      %c0_62 = arith.constant 0 : index
      %102 = vector.load %arg4[%c0_61, %c0_62] : memref<16x128xf32, #tpu.memory_space<vmem>>, vector<16x128xf32>
      tpu.vector_store %arg4[%c0_61, %c0_62], %101 {strides = array<i32>} : memref<16x128xf32, #tpu.memory_space<vmem>>, vector<16x128xf32>,
    } else {
    }
    %c0 = arith.constant 0 : index
    %c0_1 = arith.constant 0 : index
    %3 = vector.load %arg4[%c0, %c0_1] : memref<16x128xf32, #tpu.memory_space<vmem>>, vector<16x128xf32>
    %c0_2 = arith.constant 0 : index
    %c0_3 = arith.constant 0 : index
    %c0_4 = arith.constant 0 : index
    %4 = vector.load %arg2[%c0_2, %c0_3, %c0_4] : memref<8x16x128xf32, #tpu.memory_space<vmem>>, vector<1x16x128xf32>
    %5 = vector.shape_cast %4 : vector<1x16x128xf32> to vector<16x128xf32>
    %6 = arith.addf %3, %5 : vector<16x128xf32>
    %cst = arith.constant 1.000000e+00 : f32
    %7 = vector.broadcast %cst : f32 to vector<16x128xf32>
    %8 = arith.cmpf ogt, %6, %7 : vector<16x128xf32>
    %9 = arith.extui %8 : vector<16x128xi1> to vector<16x128xi32>
    %10 = arith.sitofp %9 : vector<16x128xi32> to vector<16x128xf32>
    %c0_5 = arith.constant 0 : index
    %c0_6 = arith.constant 0 : index
    %c0_7 = arith.constant 0 : index
    %11 = vector.load %arg3[%c0_5, %c0_6, %c0_7] : memref<8x16x128xf32, #tpu.memory_space<vmem>>, vector<1x16x128xf32>
    %12 = vector.shape_cast %11 : vector<1x16x128xf32> to vector<16x128xf32>
    %13 = vector.shape_cast %10 : vector<16x128xf32> to vector<1x16x128xf32>
    tpu.vector_store %arg3[%c0_5, %c0_6, %c0_7], %13 {strides = array<i32>} : memref<8x16x128xf32, #tpu.memory_space<vmem>>, vector<1x16x128xf32>,
    %cst_8 = arith.constant 0.000000e+00 : f32
    %14 = vector.broadcast %cst_8 : f32 to vector<16x128xf32>
    %15 = arith.select %8, %14, %6 : vector<16x128xi1>, vector<16x128xf32>
    %c1 = arith.constant 1 : index
    %c0_9 = arith.constant 0 : index
    %c0_10 = arith.constant 0 : index
    %16 = vector.load %arg2[%c1, %c0_9, %c0_10] : memref<8x16x128xf32, #tpu.memory_space<vmem>>, vector<1x16x128xf32>
    %17 = vector.shape_cast %16 : vector<1x16x128xf32> to vector<16x128xf32>
    %18 = arith.addf %15, %17 : vector<16x128xf32>
    %cst_11 = arith.constant 1.000000e+00 : f32
    %19 = vector.broadcast %cst_11 : f32 to vector<16x128xf32>
    %20 = arith.cmpf ogt, %18, %19 : vector<16x128xf32>
    %21 = arith.extui %20 : vector<16x128xi1> to vector<16x128xi32>
    %22 = arith.sitofp %21 : vector<16x128xi32> to vector<16x128xf32>
    %c1_12 = arith.constant 1 : index
    %c0_13 = arith.constant 0 : index
    %c0_14 = arith.constant 0 : index
    %23 = vector.load %arg3[%c1_12, %c0_13, %c0_14] : memref<8x16x128xf32, #tpu.memory_space<vmem>>, vector<1x16x128xf32>
    %24 = vector.shape_cast %23 : vector<1x16x128xf32> to vector<16x128xf32>
    %25 = vector.shape_cast %22 : vector<16x128xf32> to vector<1x16x128xf32>
    tpu.vector_store %arg3[%c1_12, %c0_13, %c0_14], %25 {strides = array<i32>} : memref<8x16x128xf32, #tpu.memory_space<vmem>>, vector<1x16x128xf32>,
    %cst_15 = arith.constant 0.000000e+00 : f32
    %26 = vector.broadcast %cst_15 : f32 to vector<16x128xf32>
    %27 = arith.select %20, %26, %18 : vector<16x128xi1>, vector<16x128xf32>
    %c2 = arith.constant 2 : index
    %c0_16 = arith.constant 0 : index
    %c0_17 = arith.constant 0 : index
    %28 = vector.load %arg2[%c2, %c0_16, %c0_17] : memref<8x16x128xf32, #tpu.memory_space<vmem>>, vector<1x16x128xf32>
    %29 = vector.shape_cast %28 : vector<1x16x128xf32> to vector<16x128xf32>
    %30 = arith.addf %27, %29 : vector<16x128xf32>
    %cst_18 = arith.constant 1.000000e+00 : f32
    %31 = vector.broadcast %cst_18 : f32 to vector<16x128xf32>
    %32 = arith.cmpf ogt, %30, %31 : vector<16x128xf32>
    %33 = arith.extui %32 : vector<16x128xi1> to vector<16x128xi32>
    %34 = arith.sitofp %33 : vector<16x128xi32> to vector<16x128xf32>
    %c2_19 = arith.constant 2 : index
    %c0_20 = arith.constant 0 : index
    %c0_21 = arith.constant 0 : index
    %35 = vector.load %arg3[%c2_19, %c0_20, %c0_21] : memref<8x16x128xf32, #tpu.memory_space<vmem>>, vector<1x16x128xf32>
    %36 = vector.shape_cast %35 : vector<1x16x128xf32> to vector<16x128xf32>
    %37 = vector.shape_cast %34 : vector<16x128xf32> to vector<1x16x128xf32>
    tpu.vector_store %arg3[%c2_19, %c0_20, %c0_21], %37 {strides = array<i32>} : memref<8x16x128xf32, #tpu.memory_space<vmem>>, vector<1x16x128xf32>,
    %cst_22 = arith.constant 0.000000e+00 : f32
    %38 = vector.broadcast %cst_22 : f32 to vector<16x128xf32>
    %39 = arith.select %32, %38, %30 : vector<16x128xi1>, vector<16x128xf32>
    %c3 = arith.constant 3 : index
    %c0_23 = arith.constant 0 : index
    %c0_24 = arith.constant 0 : index
    %40 = vector.load %arg2[%c3, %c0_23, %c0_24] : memref<8x16x128xf32, #tpu.memory_space<vmem>>, vector<1x16x128xf32>
    %41 = vector.shape_cast %40 : vector<1x16x128xf32> to vector<16x128xf32>
    %42 = arith.addf %39, %41 : vector<16x128xf32>
    %cst_25 = arith.constant 1.000000e+00 : f32
    %43 = vector.broadcast %cst_25 : f32 to vector<16x128xf32>
    %44 = arith.cmpf ogt, %42, %43 : vector<16x128xf32>
    %45 = arith.extui %44 : vector<16x128xi1> to vector<16x128xi32>
    %46 = arith.sitofp %45 : vector<16x128xi32> to vector<16x128xf32>
    %c3_26 = arith.constant 3 : index
    %c0_27 = arith.constant 0 : index
    %c0_28 = arith.constant 0 : index
    %47 = vector.load %arg3[%c3_26, %c0_27, %c0_28] : memref<8x16x128xf32, #tpu.memory_space<vmem>>, vector<1x16x128xf32>
    %48 = vector.shape_cast %47 : vector<1x16x128xf32> to vector<16x128xf32>
    %49 = vector.shape_cast %46 : vector<16x128xf32> to vector<1x16x128xf32>
    tpu.vector_store %arg3[%c3_26, %c0_27, %c0_28], %49 {strides = array<i32>} : memref<8x16x128xf32, #tpu.memory_space<vmem>>, vector<1x16x128xf32>,
    %cst_29 = arith.constant 0.000000e+00 : f32
    %50 = vector.broadcast %cst_29 : f32 to vector<16x128xf32>
    %51 = arith.select %44, %50, %42 : vector<16x128xi1>, vector<16x128xf32>
    %c4 = arith.constant 4 : index
    %c0_30 = arith.constant 0 : index
    %c0_31 = arith.constant 0 : index
    %52 = vector.load %arg2[%c4, %c0_30, %c0_31] : memref<8x16x128xf32, #tpu.memory_space<vmem>>, vector<1x16x128xf32>
    %53 = vector.shape_cast %52 : vector<1x16x128xf32> to vector<16x128xf32>
    %54 = arith.addf %51, %53 : vector<16x128xf32>
    %cst_32 = arith.constant 1.000000e+00 : f32
    %55 = vector.broadcast %cst_32 : f32 to vector<16x128xf32>
    %56 = arith.cmpf ogt, %54, %55 : vector<16x128xf32>
    %57 = arith.extui %56 : vector<16x128xi1> to vector<16x128xi32>
    %58 = arith.sitofp %57 : vector<16x128xi32> to vector<16x128xf32>
    %c4_33 = arith.constant 4 : index
    %c0_34 = arith.constant 0 : index
    %c0_35 = arith.constant 0 : index
    %59 = vector.load %arg3[%c4_33, %c0_34, %c0_35] : memref<8x16x128xf32, #tpu.memory_space<vmem>>, vector<1x16x128xf32>
    %60 = vector.shape_cast %59 : vector<1x16x128xf32> to vector<16x128xf32>
    %61 = vector.shape_cast %58 : vector<16x128xf32> to vector<1x16x128xf32>
    tpu.vector_store %arg3[%c4_33, %c0_34, %c0_35], %61 {strides = array<i32>} : memref<8x16x128xf32, #tpu.memory_space<vmem>>, vector<1x16x128xf32>,
    %cst_36 = arith.constant 0.000000e+00 : f32
    %62 = vector.broadcast %cst_36 : f32 to vector<16x128xf32>
    %63 = arith.select %56, %62, %54 : vector<16x128xi1>, vector<16x128xf32>
    %c5 = arith.constant 5 : index
    %c0_37 = arith.constant 0 : index
    %c0_38 = arith.constant 0 : index
    %64 = vector.load %arg2[%c5, %c0_37, %c0_38] : memref<8x16x128xf32, #tpu.memory_space<vmem>>, vector<1x16x128xf32>
    %65 = vector.shape_cast %64 : vector<1x16x128xf32> to vector<16x128xf32>
    %66 = arith.addf %63, %65 : vector<16x128xf32>
    %cst_39 = arith.constant 1.000000e+00 : f32
    %67 = vector.broadcast %cst_39 : f32 to vector<16x128xf32>
    %68 = arith.cmpf ogt, %66, %67 : vector<16x128xf32>
    %69 = arith.extui %68 : vector<16x128xi1> to vector<16x128xi32>
    %70 = arith.sitofp %69 : vector<16x128xi32> to vector<16x128xf32>
    %c5_40 = arith.constant 5 : index
    %c0_41 = arith.constant 0 : index
    %c0_42 = arith.constant 0 : index
    %71 = vector.load %arg3[%c5_40, %c0_41, %c0_42] : memref<8x16x128xf32, #tpu.memory_space<vmem>>, vector<1x16x128xf32>
    %72 = vector.shape_cast %71 : vector<1x16x128xf32> to vector<16x128xf32>
    %73 = vector.shape_cast %70 : vector<16x128xf32> to vector<1x16x128xf32>
    tpu.vector_store %arg3[%c5_40, %c0_41, %c0_42], %73 {strides = array<i32>} : memref<8x16x128xf32, #tpu.memory_space<vmem>>, vector<1x16x128xf32>,
    %cst_43 = arith.constant 0.000000e+00 : f32
    %74 = vector.broadcast %cst_43 : f32 to vector<16x128xf32>
    %75 = arith.select %68, %74, %66 : vector<16x128xi1>, vector<16x128xf32>
    %c6 = arith.constant 6 : index
    %c0_44 = arith.constant 0 : index
    %c0_45 = arith.constant 0 : index
    %76 = vector.load %arg2[%c6, %c0_44, %c0_45] : memref<8x16x128xf32, #tpu.memory_space<vmem>>, vector<1x16x128xf32>
    %77 = vector.shape_cast %76 : vector<1x16x128xf32> to vector<16x128xf32>
    %78 = arith.addf %75, %77 : vector<16x128xf32>
    %cst_46 = arith.constant 1.000000e+00 : f32
    %79 = vector.broadcast %cst_46 : f32 to vector<16x128xf32>
    %80 = arith.cmpf ogt, %78, %79 : vector<16x128xf32>
    %81 = arith.extui %80 : vector<16x128xi1> to vector<16x128xi32>
    %82 = arith.sitofp %81 : vector<16x128xi32> to vector<16x128xf32>
    %c6_47 = arith.constant 6 : index
    %c0_48 = arith.constant 0 : index
    %c0_49 = arith.constant 0 : index
    %83 = vector.load %arg3[%c6_47, %c0_48, %c0_49] : memref<8x16x128xf32, #tpu.memory_space<vmem>>, vector<1x16x128xf32>
    %84 = vector.shape_cast %83 : vector<1x16x128xf32> to vector<16x128xf32>
    %85 = vector.shape_cast %82 : vector<16x128xf32> to vector<1x16x128xf32>
    tpu.vector_store %arg3[%c6_47, %c0_48, %c0_49], %85 {strides = array<i32>} : memref<8x16x128xf32, #tpu.memory_space<vmem>>, vector<1x16x128xf32>,
    %cst_50 = arith.constant 0.000000e+00 : f32
    %86 = vector.broadcast %cst_50 : f32 to vector<16x128xf32>
    %87 = arith.select %80, %86, %78 : vector<16x128xi1>, vector<16x128xf32>
    %c7 = arith.constant 7 : index
    %c0_51 = arith.constant 0 : index
    %c0_52 = arith.constant 0 : index
    %88 = vector.load %arg2[%c7, %c0_51, %c0_52] : memref<8x16x128xf32, #tpu.memory_space<vmem>>, vector<1x16x128xf32>
    %89 = vector.shape_cast %88 : vector<1x16x128xf32> to vector<16x128xf32>
    %90 = arith.addf %87, %89 : vector<16x128xf32>
    %cst_53 = arith.constant 1.000000e+00 : f32
    %91 = vector.broadcast %cst_53 : f32 to vector<16x128xf32>
    %92 = arith.cmpf ogt, %90, %91 : vector<16x128xf32>
    %93 = arith.extui %92 : vector<16x128xi1> to vector<16x128xi32>
    %94 = arith.sitofp %93 : vector<16x128xi32> to vector<16x128xf32>
    %c7_54 = arith.constant 7 : index
    %c0_55 = arith.constant 0 : index
    %c0_56 = arith.constant 0 : index
    %95 = vector.load %arg3[%c7_54, %c0_55, %c0_56] : memref<8x16x128xf32, #tpu.memory_space<vmem>>, vector<1x16x128xf32>
    %96 = vector.shape_cast %95 : vector<1x16x128xf32> to vector<16x128xf32>
    %97 = vector.shape_cast %94 : vector<16x128xf32> to vector<1x16x128xf32>
    tpu.vector_store %arg3[%c7_54, %c0_55, %c0_56], %97 {strides = array<i32>} : memref<8x16x128xf32, #tpu.memory_space<vmem>>, vector<1x16x128xf32>,
    %cst_57 = arith.constant 0.000000e+00 : f32
    %98 = vector.broadcast %cst_57 : f32 to vector<16x128xf32>
    %99 = arith.select %92, %98, %90 : vector<16x128xi1>, vector<16x128xf32>
    %c0_58 = arith.constant 0 : index
    %c0_59 = arith.constant 0 : index
    %100 = vector.load %arg4[%c0_58, %c0_59] : memref<16x128xf32, #tpu.memory_space<vmem>>, vector<16x128xf32>
    tpu.vector_store %arg4[%c0_58, %c0_59], %99 {strides = array<i32>} : memref<16x128xf32, #tpu.memory_space<vmem>>, vector<16x128xf32>,
    return
  }
  func.func @transform_0(%arg0: i32, %arg1: i32) -> (i32, i32, i32) {
    %c0_i32 = arith.constant 0 : i32
    %c0_i32_0 = arith.constant 0 : i32
    return %arg1, %arg0, %c0_i32 : i32, i32, i32
  }
  func.func @transform_1(%arg0: i32, %arg1: i32) -> (i32, i32, i32) {
    %c0_i32 = arith.constant 0 : i32
    %c0_i32_0 = arith.constant 0 : i32
    return %arg1, %arg0, %c0_i32 : i32, i32, i32
  }
}

</mosaic_0001>

<bundles_post_ra>
// kernel: tpu_custom_call.1
= control target key start
LH: loop header
LB: loop body
LE: loop exit
PB: predicated region body
PF: predicated region fallthrough
CT: control target
= control target key end

     0   :  { %6 = vsyncpa [#allocation4], 0  ;;  %s296_s0 = inlined_call_operand.hbm [shape: f32[8,16,128], index: 0, kind: input, shape index: {}]   ;;  %s297_s1 = inlined_call_operand.hbm [shape: f32[8,16,128], index: 1, kind: output, shape index: {}]  }
   0x1   :  { %7 = vsyncpa [#allocation5], 0  ;;  %s12_s8 = sshll.u32 %s296_s0, 4  ;;  %s253_s9 = smov [#allocation3]   ;;  %s13_s8 = int_to_ptr.hbm [resolvable:$true] %s12_s8 }
   0x2   :  { %s14_s10 = sshll.u32 %s253_s9, 4  ;;  %s254_s11 = smov 128   ;;  %s15_s10 = int_to_ptr.vmem [resolvable:$true] %s14_s10 }
   0x3   :  { %s255_s12 = smov 8  }
   0x4   :  { %20 = dma.hbm_to_vmem [thread:$0]  %s13_s8, 2048, %s15_s10, [#allocation4], %s254_s11, %s254_s11, %s255_s12  }
   0x5   :  { %249 = dma.done.wait [#allocation4], 2048  }
   0x6   :  { %250 = vsyncadd [#allocation4], 4294965248  ;;  %v33_v0 = vld [vmem:[#allocation3] sm:$0xff]  ;;  %v34_v1 = vld [vmem:[#allocation3 + $0x8] sm:$0xff]  ;;  %v256_v4 = vmov 0.0   ;;  %s257_s0 = smov [#allocation6]  }
   0x7   :  { %v48_v2 = vld [vmem:[#allocation3 + $0x10] sm:$0xff]  ;;  %vm37_vm0 = vcmp.gt.f32.partialorder %v33_v0, 1.0  ;;  %vm38_vm1 = vcmp.gt.f32.partialorder %v34_v1, 1.0  ;;  %v49_v3 = vld [vmem:[#allocation3 + $0x18] sm:$0xff]  ;;  %v64_v11 = vld [vmem:[#allocation3 + $0x20] sm:$0xff]  ;;  %s165_s13 = sshll.u32 %s257_s0, 4  ;;  %s166_s13 = int_to_ptr.vmem [resolvable:$true] %s165_s13 }
   0x8   :  { %v180_v5 = vsel %vm37_vm0, 1.0, %v256_v4  ;;  %v45_v6 = vsel %vm37_vm0, 0.0, %v33_v0  ;;  %v181_v7 = vsel %vm38_vm1, 1.0, %v256_v4  ;;  %v46_v8 = vsel %vm38_vm1, 0.0, %v34_v1  ;;  %v65_v12 = vld [vmem:[#allocation3 + $0x28] sm:$0xff]  ;;  %v80_v19 = vld [vmem:[#allocation3 + $0x30] sm:$0xff] }
   0x9   :  { %43 = vst [vmem:[#allocation6] sm:$0xff] %v180_v5  ;;  %v50_v9 = vadd.f32 %v48_v2, %v45_v6  ;;  %v51_v10 = vadd.f32 %v49_v3, %v46_v8  ;;  %v81_v20 = vld [vmem:[#allocation3 + $0x38] sm:$0xff]  ;;  %v96_v27 = vld [vmem:[#allocation3 + $0x40] sm:$0xff]  ;;  %v97_v28 = vld [vmem:[#allocation3 + $0x48] sm:$0xff]  ;;  %s167_s16 = sshll.u32 %s297_s1, 4  ;;  %s168_s16 = int_to_ptr.hbm [resolvable:$true] %s167_s16 }
   0xa   :  { %44 = vst [vmem:[#allocation6 + $0x8] sm:$0xff] %v181_v7  ;;  %v112_v35 = vld [vmem:[#allocation3 + $0x50] sm:$0xff]  ;;  %v113_v36 = vld [vmem:[#allocation3 + $0x58] sm:$0xff]  ;;  %v128_v43 = vld [vmem:[#allocation3 + $0x60] sm:$0xff] }
   0xb   :  { %vm52_vm2 = vcmp.gt.f32.partialorder %v50_v9, 1.0  ;;  %vm53_vm3 = vcmp.gt.f32.partialorder %v51_v10, 1.0  ;;  %v129_v44 = vld [vmem:[#allocation3 + $0x68] sm:$0xff]  ;;  %v144_v51 = vld [vmem:[#allocation3 + $0x70] sm:$0xff]  ;;  %v145_v52 = vld [vmem:[#allocation3 + $0x78] sm:$0xff] }
   0xc   :  { %v182_v13 = vsel %vm52_vm2, 1.0, %v256_v4  ;;  %v61_v14 = vsel %vm52_vm2, 0.0, %v50_v9  ;;  %v183_v15 = vsel %vm53_vm3, 1.0, %v256_v4  ;;  %v62_v16 = vsel %vm53_vm3, 0.0, %v51_v10 }
   0xd   :  { %59 = vst [vmem:[#allocation6 + $0x10] sm:$0xff] %v182_v13  ;;  %v66_v17 = vadd.f32 %v64_v11, %v61_v14  ;;  %v67_v18 = vadd.f32 %v65_v12, %v62_v16 }
   0xe   :  { %60 = vst [vmem:[#allocation6 + $0x18] sm:$0xff] %v183_v15 }
   0xf   :  { %vm68_vm4 = vcmp.gt.f32.partialorder %v66_v17, 1.0  ;;  %vm69_vm5 = vcmp.gt.f32.partialorder %v67_v18, 1.0 }
  0x10   :  { %v184_v21 = vsel %vm68_vm4, 1.0, %v256_v4  ;;  %v77_v22 = vsel %vm68_vm4, 0.0, %v66_v17  ;;  %v185_v23 = vsel %vm69_vm5, 1.0, %v256_v4  ;;  %v78_v24 = vsel %vm69_vm5, 0.0, %v67_v18 }
  0x11   :  { %75 = vst [vmem:[#allocation6 + $0x20] sm:$0xff] %v184_v21  ;;  %v82_v25 = vadd.f32 %v80_v19, %v77_v22  ;;  %v83_v26 = vadd.f32 %v81_v20, %v78_v24 }
  0x12   :  { %76 = vst [vmem:[#allocation6 + $0x28] sm:$0xff] %v185_v23 }
  0x13   :  { %vm84_vm6 = vcmp.gt.f32.partialorder %v82_v25, 1.0  ;;  %vm85_vm7 = vcmp.gt.f32.partialorder %v83_v26, 1.0 }
  0x14   :  { %v186_v29 = vsel %vm84_vm6, 1.0, %v256_v4  ;;  %v93_v30 = vsel %vm84_vm6, 0.0, %v82_v25  ;;  %v187_v31 = vsel %vm85_vm7, 1.0, %v256_v4  ;;  %v94_v32 = vsel %vm85_vm7, 0.0, %v83_v26 }
  0x15   :  { %91 = vst [vmem:[#allocation6 + $0x30] sm:$0xff] %v186_v29  ;;  %v98_v33 = vadd.f32 %v96_v27, %v93_v30  ;;  %v99_v34 = vadd.f32 %v97_v28, %v94_v32 }
  0x16   :  { %92 = vst [vmem:[#allocation6 + $0x38] sm:$0xff] %v187_v31 }
  0x17   :  { %vm100_vm8 = vcmp.gt.f32.partialorder %v98_v33, 1.0  ;;  %vm101_vm9 = vcmp.gt.f32.partialorder %v99_v34, 1.0 }
  0x18   :  { %v188_v37 = vsel %vm100_vm8, 1.0, %v256_v4  ;;  %v109_v38 = vsel %vm100_vm8, 0.0, %v98_v33  ;;  %v189_v39 = vsel %vm101_vm9, 1.0, %v256_v4  ;;  %v110_v40 = vsel %vm101_vm9, 0.0, %v99_v34 }
  0x19   :  { %107 = vst [vmem:[#allocation6 + $0x40] sm:$0xff] %v188_v37  ;;  %v114_v41 = vadd.f32 %v112_v35, %v109_v38  ;;  %v115_v42 = vadd.f32 %v113_v36, %v110_v40 }
  0x1a   :  { %108 = vst [vmem:[#allocation6 + $0x48] sm:$0xff] %v189_v39 }
  0x1b   :  { %vm116_vm10 = vcmp.gt.f32.partialorder %v114_v41, 1.0  ;;  %vm117_vm11 = vcmp.gt.f32.partialorder %v115_v42, 1.0 }
  0x1c   :  { %v190_v45 = vsel %vm116_vm10, 1.0, %v256_v4  ;;  %v125_v46 = vsel %vm116_vm10, 0.0, %v114_v41  ;;  %v191_v47 = vsel %vm117_vm11, 1.0, %v256_v4  ;;  %v126_v48 = vsel %vm117_vm11, 0.0, %v115_v42 }
  0x1d   :  { %123 = vst [vmem:[#allocation6 + $0x50] sm:$0xff] %v190_v45  ;;  %v130_v49 = vadd.f32 %v128_v43, %v125_v46  ;;  %v131_v50 = vadd.f32 %v129_v44, %v126_v48 }
  0x1e   :  { %124 = vst [vmem:[#allocation6 + $0x58] sm:$0xff] %v191_v47 }
  0x1f   :  { %vm132_vm12 = vcmp.gt.f32.partialorder %v130_v49, 1.0  ;;  %vm133_vm13 = vcmp.gt.f32.partialorder %v131_v50, 1.0 }
  0x20   :  { %v192_v53 = vsel %vm132_vm12, 1.0, %v256_v4  ;;  %v141_v54 = vsel %vm132_vm12, 0.0, %v130_v49  ;;  %v193_v55 = vsel %vm133_vm13, 1.0, %v256_v4  ;;  %v142_v56 = vsel %vm133_vm13, 0.0, %v131_v50 }
  0x21   :  { %139 = vst [vmem:[#allocation6 + $0x60] sm:$0xff] %v192_v53  ;;  %v146_v57 = vadd.f32 %v144_v51, %v141_v54  ;;  %v147_v58 = vadd.f32 %v145_v52, %v142_v56 }
  0x22   :  { %140 = vst [vmem:[#allocation6 + $0x68] sm:$0xff] %v193_v55 }
  0x23   :  { %vm148_vm14 = vcmp.gt.f32.partialorder %v146_v57, 1.0  ;;  %vm149_vm15 = vcmp.gt.f32.partialorder %v147_v58, 1.0 }
  0x24   :  { %v194_v59 = vsel %vm148_vm14, 1.0, %v256_v4  ;;  %v195_v60 = vsel %vm149_vm15, 1.0, %v256_v4 }
  0x25   :  { %155 = vst [vmem:[#allocation6 + $0x70] sm:$0xff] %v194_v59 }
  0x26   :  { %156 = vst [vmem:[#allocation6 + $0x78] sm:$0xff] %v195_v60 }
  0x27   :  { %173 = dma.vmem_to_hbm [thread:$0]  %s166_s13, 2048, %s168_s16, [#allocation5], %s254_s11, %s254_s11, %s255_s12  }
  0x28   :  { %251 = dma.done.wait [#allocation5], 2048  }
  0x29   :  { %252 = vsyncadd [#allocation5], 4294965248 }
  0x2a   :  { %178 = vsyncpa [#allocation4], 1 }
  0x2b   :  { %179 = vsyncpa [#allocation5], 1 }

</bundles_post_ra>
